<compile_context>
chip_gen: v7x
topology: tpu7x:2x2x1
jax: 0.10.0
libtpu: 0.0.40
codegen_flags: <defaults>
</compile_context>

<pallas_src>
import functools

import jax
import jax.numpy as jnp
from jax.experimental import pallas as pl
from jax.experimental.pallas import tpu as pltpu


_LANE = 128              # pad channel dims to the 128-lane vreg width
_NODE_PAD = 256          # node-count padding granularity on the tiled path
_TM = 1024               # max adj row-tile
_TK = 2048               # max adj k-tile (streamed axis)
_FUSED_MAX_NODES = 256   # below this, run both layers in a single fused kernel


def _round_up(x, m):
    return (x + m - 1) // m * m


def _pick_tile(n_pad, max_tile):
    """Largest tile <= max_tile that divides n_pad (n_pad is a mult of 256)."""
    t = min(max_tile, n_pad)
    while n_pad % t:
        t //= 2
    return t


# ---------------------------------------------------------------------------
# Kernels
# ---------------------------------------------------------------------------
def _fused_two_layer_kernel(adj1_ref, adj2_ref, x_ref, w1_ref, b1_ref,
                            w2_ref, b2_ref, out_ref):
    """Both GCN layers fused; everything resident in VMEM (tiny-N path)."""
    # layer 1: h1 = relu(adj1 @ (x @ W1 + b1))
    h = jnp.dot(x_ref[...], w1_ref[...], preferred_element_type=jnp.float32)
    h = h + b1_ref[...]                                       # f32 epilogue
    h1 = jnp.dot(adj1_ref[...], h.astype(adj1_ref.dtype),
                 preferred_element_type=jnp.float32)
    h1 = jnp.maximum(h1, 0.0)
    # layer 2: out = adj2 @ (h1 @ W2 + b2)
    g = jnp.dot(h1.astype(w2_ref.dtype), w2_ref[...],
                preferred_element_type=jnp.float32)
    g = g + b2_ref[...]
    out = jnp.dot(adj2_ref[...], g.astype(adj2_ref.dtype),
                  preferred_element_type=jnp.float32)
    out_ref[...] = out.astype(out_ref.dtype)


def _gcn_layer_kernel(adj_ref, x_ref, w_ref, b_ref, out_ref, acc_ref,
                      *, tk, apply_relu):
    """One directed-GCN layer, linear fused into the aggregate:

       out[i-tile] = act( sum_k adj[i-tile, k-tile] @ (x[k-tile] @ W + b) )

    adj tiles are streamed from HBM; x / W / b are pinned whole in VMEM
    (constant index maps) so the only per-step HBM traffic is the adj tile.
    The (tk, c_out) linear is recomputed per row tile, which is free MXU work
    under the adj-bound HBM roofline.
    """
    k = pl.program_id(1)

    @pl.when(k == 0)
    def _():
        acc_ref[...] = jnp.zeros_like(acc_ref)

    k0 = pl.multiple_of(k * tk, tk)
    g = jnp.dot(x_ref[pl.ds(k0, tk), :], w_ref[...],
                preferred_element_type=jnp.float32)
    g = g + b_ref[...]                                        # f32 epilogue
    acc_ref[...] += jnp.dot(adj_ref[...], g.astype(adj_ref.dtype),
                            preferred_element_type=jnp.float32)

    @pl.when(k == pl.num_programs(1) - 1)
    def _():
        y = acc_ref[...]
        if apply_relu:
            y = jnp.maximum(y, 0.0)
        out_ref[...] = y.astype(out_ref.dtype)


# ---------------------------------------------------------------------------
# pallas_call wrappers
# ---------------------------------------------------------------------------
def _fused_two_layer(adj1, adj2, x, w1_t, b1, w2_t, b2):
    n_pad = x.shape[0]
    c_out = w2_t.shape[1]
    return pl.pallas_call(
        _fused_two_layer_kernel,
        out_shape=jax.ShapeDtypeStruct((n_pad, c_out), jnp.float32),
    )(adj1, adj2, x, w1_t, b1, w2_t, b2)


def _gcn_layer_tiled(adj_bf16, x_bf16, w_t_bf16, b_f32, *, apply_relu,
                     out_dtype):
    n_pad = adj_bf16.shape[0]
    c_in = x_bf16.shape[1]
    c_out = w_t_bf16.shape[1]
    tm = _pick_tile(n_pad, _TM)
    tk = _pick_tile(n_pad, _TK)

    # Explicit VMEM budget: double-buffered adj tile + pinned x + acc + output
    # (portable past v5e's 16 MiB default scoped limit, under v7x's 64 MiB).
    out_isz = jnp.dtype(out_dtype).itemsize
    vmem_bytes = (2 * tm * tk * 2            # adj double-buffer (bf16)
                  + 2 * n_pad * c_in * 2     # pinned x (budget 2 bufs)
                  + 2 * tm * c_out * out_isz # output double-buffer
                  + tm * c_out * 4           # f32 accumulator scratch
                  + 2 * c_in * c_out * 2 + 2 * c_out * 4   # W, b
                  + (4 << 20))               # margin
    vmem_limit = min(max(vmem_bytes, 32 << 20), 64 << 20)

    kernel = functools.partial(_gcn_layer_kernel, tk=tk, apply_relu=apply_relu)
    return pl.pallas_call(
        kernel,
        out_shape=jax.ShapeDtypeStruct((n_pad, c_out), out_dtype),
        grid=(n_pad // tm, n_pad // tk),
        in_specs=[
            pl.BlockSpec((tm, tk), lambda i, k: (i, k)),        # adj (streamed)
            pl.BlockSpec((n_pad, c_in), lambda i, k: (0, 0)),   # x pinned whole
            pl.BlockSpec((c_in, c_out), lambda i, k: (0, 0)),   # W^T pinned
            pl.BlockSpec((1, c_out), lambda i, k: (0, 0)),      # bias pinned
        ],
        out_specs=pl.BlockSpec((tm, c_out), lambda i, k: (i, 0)),
        scratch_shapes=[pltpu.VMEM((tm, c_out), jnp.float32)],
        compiler_params=pltpu.CompilerParams(
            dimension_semantics=("parallel", "arbitrary"),
            vmem_limit_bytes=vmem_limit),
    )(adj_bf16, x_bf16, w_t_bf16, b_f32)


# ---------------------------------------------------------------------------
# Graph preprocessing (plain JAX glue, not a kernel)
# ---------------------------------------------------------------------------
def build_norm_adj(edge_index, num_nodes, padded_nodes, alpha, beta,
                   self_loops=True, dtype=jnp.float32):
    """Dense normalized adjacency adj[col, row] += deg_in^-alpha * deg_out^-beta.

    Scatter-adds directly into `dtype` (bf16 for the kernels) so XLA never
    materializes a separate f32 N^2 intermediate just to cast it.
    """
    row, col = edge_index[0], edge_index[1]
    if self_loops:
        loops = jnp.arange(num_nodes, dtype=edge_index.dtype)
        row = jnp.concatenate([row, loops])
        col = jnp.concatenate([col, loops])
    ones = jnp.ones(row.shape[0], dtype=jnp.float32)
    in_degree = jax.ops.segment_sum(ones, col, num_segments=num_nodes)
    out_degree = jax.ops.segment_sum(ones, row, num_segments=num_nodes)
    in_norm_inv = jnp.where(in_degree > 0, in_degree ** (-alpha), 0.0)
    out_norm_inv = jnp.where(out_degree > 0, out_degree ** (-beta), 0.0)
    norm = in_norm_inv[col] * out_norm_inv[row]
    adj = jnp.zeros((padded_nodes, padded_nodes), dtype)
    adj = adj.at[col, row].add(norm.astype(dtype))
    return adj


# ---------------------------------------------------------------------------
# Module
# ---------------------------------------------------------------------------
class EdgeTargetEncoderPallas:
    """JAX/Pallas equivalent of the PyTorch EdgeTargetEncoder."""

    def __init__(self, in_channels, hidden_channels, out_channels,
                 alpha=0.5, beta=0.5, self_loops=True, key=None):
        self.alpha = alpha
        self.beta = beta
        self.self_loops = self_loops
        self.in_channels = in_channels
        self.hidden_channels = hidden_channels
        self.out_channels = out_channels

        key = jax.random.PRNGKey(0) if key is None else key
        k1, k2, k3, k4 = jax.random.split(key, 4)
        s1 = 1.0 / jnp.sqrt(in_channels)
        s2 = 1.0 / jnp.sqrt(hidden_channels)
        # torch.nn.Linear-shaped f32 master parameters.
        self.w1 = jax.random.uniform(k1, (hidden_channels, in_channels),
                                     jnp.float32, -s1, s1)
        self.b1 = jax.random.uniform(k2, (hidden_channels,), jnp.float32, -s1, s1)
        self.w2 = jax.random.uniform(k3, (out_channels, hidden_channels),
                                     jnp.float32, -s2, s2)
        self.b2 = jax.random.uniform(k4, (out_channels,), jnp.float32, -s2, s2)

        # Lane-dense padded copies used by the kernels (padding done once here):
        # weights -> bf16 [C_in_pad, C_out_pad], biases -> f32 [1, C_out_pad].
        self.c_in_pad = _round_up(in_channels, _LANE)
        self.hid_pad = _round_up(hidden_channels, _LANE)
        self.c_out_pad = _round_up(out_channels, _LANE)
        self.w1_t = (jnp.zeros((self.c_in_pad, self.hid_pad), jnp.float32)
                     .at[:in_channels, :hidden_channels].set(self.w1.T)
                     .astype(jnp.bfloat16))
        self.b1_p = (jnp.zeros((1, self.hid_pad), jnp.float32)
                     .at[0, :hidden_channels].set(self.b1))
        self.w2_t = (jnp.zeros((self.hid_pad, self.c_out_pad), jnp.float32)
                     .at[:hidden_channels, :out_channels].set(self.w2.T)
                     .astype(jnp.bfloat16))
        self.b2_p = (jnp.zeros((1, self.c_out_pad), jnp.float32)
                     .at[0, :out_channels].set(self.b2))

    def __call__(self, x, edge_index):
        n, c_in = x.shape
        fused = n <= _FUSED_MAX_NODES
        # Node padding decoupled from tile size: lane multiple on the fused
        # path, 256 on the tiled path (tiles are then chosen to divide n_pad).
        n_pad = _round_up(n, _LANE if fused else _NODE_PAD)

        # conv1 runs on torch.flip(edge_index, [0]) -> row/col swapped.
        adj1 = build_norm_adj(jnp.flip(edge_index, axis=0), n, n_pad,
                              self.alpha, self.beta, self.self_loops,
                              dtype=jnp.bfloat16)
        adj2 = build_norm_adj(edge_index, n, n_pad, self.alpha, self.beta,
                              self.self_loops, dtype=jnp.bfloat16)

        x_pad = (jnp.zeros((n_pad, self.c_in_pad), jnp.bfloat16)
                 .at[:n, :c_in].set(x.astype(jnp.bfloat16)))

        if fused:
            out = _fused_two_layer(adj1, adj2, x_pad,
                                   self.w1_t, self.b1_p, self.w2_t, self.b2_p)
        else:
            # layer 1: relu(adj1 @ (x @ W1 + b1)), linear fused into aggregate
            h = _gcn_layer_tiled(adj1, x_pad, self.w1_t, self.b1_p,
                                 apply_relu=True, out_dtype=jnp.bfloat16)
            # layer 2: adj2 @ (h @ W2 + b2)
            out = _gcn_layer_tiled(adj2, h, self.w2_t, self.b2_p,
                                   apply_relu=False, out_dtype=jnp.float32)
        return out[:n, :self.out_channels]

    # Pure-JAX f32 reference (unpadded) for correctness checks.
    def reference(self, x, edge_index):
        n = x.shape[0]
        adj1 = build_norm_adj(jnp.flip(edge_index, axis=0), n, n,
                              self.alpha, self.beta, self.self_loops)
        adj2 = build_norm_adj(edge_index, n, n,
                              self.alpha, self.beta, self.self_loops)
        h = jnp.maximum(adj1 @ (x @ self.w1.T + self.b1), 0.0)
        return adj2 @ (h @ self.w2.T + self.b2)


if __name__ == "__main__":
    key = jax.random.PRNGKey(0)
    kx, ke, kp, kx2, ke2, kx3, ke3 = jax.random.split(key, 7)

    num_nodes = 16
    in_channels = 8
    hidden_channels = 32
    out_channels = 16
    num_edges = 40

    model = EdgeTargetEncoderPallas(in_channels, hidden_channels, out_channels,
                                    key=kp)
    fwd = jax.jit(model.__call__)

    # --- tiny graph: exercises the fused two-layer kernel -------------------
    x = jax.random.normal(kx, (num_nodes, in_channels), jnp.float32)
    edge_index = jax.random.randint(ke, (2, num_edges), 0, num_nodes,
                                    dtype=jnp.int32)
    out = jax.block_until_ready(fwd(x, edge_index))
    assert out.shape == (num_nodes, out_channels)
    assert out.dtype == jnp.float32
    assert bool(jnp.all(jnp.isfinite(out)))
    ref = model.reference(x, edge_index)
    assert bool(jnp.allclose(out, ref, rtol=0.1, atol=0.1))

    # --- mid graph: tiled path with ragged (non-tile-multiple) node count ---
    n_mid, e_mid = 300, 900
    x_mid = jax.random.normal(kx2, (n_mid, in_channels), jnp.float32)
    ei_mid = jax.random.randint(ke2, (2, e_mid), 0, n_mid, dtype=jnp.int32)
    out_mid = jax.block_until_ready(fwd(x_mid, ei_mid))
    assert out_mid.shape == (n_mid, out_channels)
    assert bool(jnp.all(jnp.isfinite(out_mid)))
    ref_mid = model.reference(x_mid, ei_mid)
    assert bool(jnp.allclose(out_mid, ref_mid, rtol=0.1, atol=0.1))

    # --- larger graph: exercises the big-tile fused linear+aggregate path ---
    n_big, e_big = 2048, 4096
    x_big = jax.random.normal(kx3, (n_big, in_channels), jnp.float32)
    ei_big = jax.random.randint(ke3, (2, e_big), 0, n_big, dtype=jnp.int32)
    out_big = jax.block_until_ready(fwd(x_big, ei_big))
    assert out_big.shape == (n_big, out_channels)
    assert bool(jnp.all(jnp.isfinite(out_big)))
    ref_big = model.reference(x_big, ei_big)
    assert bool(jnp.allclose(out_big, ref_big, rtol=0.1, atol=0.1))

    print("KERNEL_OK")
</pallas_src>

<mosaic_0001>
module attributes {stable_mosaic.version = 11 : i64} {
  func.func @_fused_two_layer_kernel(%arg0: memref<128x128xbf16, #tpu.memory_space<vmem>>, %arg1: memref<128x128xbf16, #tpu.memory_space<vmem>>, %arg2: memref<128x128xbf16, #tpu.memory_space<vmem>>, %arg3: memref<128x128xbf16, #tpu.memory_space<vmem>>, %arg4: memref<1x128xf32, #tpu.memory_space<vmem>>, %arg5: memref<128x128xbf16, #tpu.memory_space<vmem>>, %arg6: memref<1x128xf32, #tpu.memory_space<vmem>>, %arg7: memref<128x128xf32, #tpu.memory_space<vmem>>) attributes {dimension_semantics = [], scalar_prefetch = 0 : i64, scratch_operands = 0 : i64, tpu.core_type = #tpu.core_type<tc>} {
    %c0 = arith.constant 0 : index
    %c0_0 = arith.constant 0 : index
    %0 = vector.load %arg2[%c0, %c0_0] : memref<128x128xbf16, #tpu.memory_space<vmem>>, vector<128x128xbf16>
    %c0_1 = arith.constant 0 : index
    %c0_2 = arith.constant 0 : index
    %1 = vector.load %arg3[%c0_1, %c0_2] : memref<128x128xbf16, #tpu.memory_space<vmem>>, vector<128x128xbf16>
    %cst = arith.constant dense<0.000000e+00> : vector<128x128xf32>
    %2 = tpu.matmul %0, %1, %cst {dimension_numbers = #tpu.dot_dimension_numbers<[1], [0], [0], [1], [0, 0, 1, 1], [], []>} : vector<128x128xbf16>, vector<128x128xbf16>, vector<128x128xf32> -> vector<128x128xf32>
    %c0_3 = arith.constant 0 : index
    %c0_4 = arith.constant 0 : index
    %3 = vector.load %arg4[%c0_3, %c0_4] : memref<1x128xf32, #tpu.memory_space<vmem>>, vector<1x128xf32>
    %4 = vector.broadcast %3 : vector<1x128xf32> to vector<128x128xf32>
    %5 = arith.addf %2, %4 : vector<128x128xf32>
    %c0_5 = arith.constant 0 : index
    %c0_6 = arith.constant 0 : index
    %6 = vector.load %arg0[%c0_5, %c0_6] : memref<128x128xbf16, #tpu.memory_space<vmem>>, vector<128x128xbf16>
    %7 = arith.truncf %5 : vector<128x128xf32> to vector<128x128xbf16>
    %cst_7 = arith.constant dense<0.000000e+00> : vector<128x128xf32>
    %8 = tpu.matmul %6, %7, %cst_7 {dimension_numbers = #tpu.dot_dimension_numbers<[1], [0], [0], [1], [0, 0, 1, 1], [], []>} : vector<128x128xbf16>, vector<128x128xbf16>, vector<128x128xf32> -> vector<128x128xf32>
    %cst_8 = arith.constant 0.000000e+00 : f32
    %9 = vector.broadcast %cst_8 : f32 to vector<128x128xf32>
    %10 = arith.maximumf %8, %9 : vector<128x128xf32>
    %11 = arith.truncf %10 : vector<128x128xf32> to vector<128x128xbf16>
    %c0_9 = arith.constant 0 : index
    %c0_10 = arith.constant 0 : index
    %12 = vector.load %arg5[%c0_9, %c0_10] : memref<128x128xbf16, #tpu.memory_space<vmem>>, vector<128x128xbf16>
    %cst_11 = arith.constant dense<0.000000e+00> : vector<128x128xf32>
    %13 = tpu.matmul %11, %12, %cst_11 {dimension_numbers = #tpu.dot_dimension_numbers<[1], [0], [0], [1], [0, 0, 1, 1], [], []>} : vector<128x128xbf16>, vector<128x128xbf16>, vector<128x128xf32> -> vector<128x128xf32>
    %c0_12 = arith.constant 0 : index
    %c0_13 = arith.constant 0 : index
    %14 = vector.load %arg6[%c0_12, %c0_13] : memref<1x128xf32, #tpu.memory_space<vmem>>, vector<1x128xf32>
    %15 = vector.broadcast %14 : vector<1x128xf32> to vector<128x128xf32>
    %16 = arith.addf %13, %15 : vector<128x128xf32>
    %c0_14 = arith.constant 0 : index
    %c0_15 = arith.constant 0 : index
    %17 = vector.load %arg1[%c0_14, %c0_15] : memref<128x128xbf16, #tpu.memory_space<vmem>>, vector<128x128xbf16>
    %18 = arith.truncf %16 : vector<128x128xf32> to vector<128x128xbf16>
    %cst_16 = arith.constant dense<0.000000e+00> : vector<128x128xf32>
    %19 = tpu.matmul %17, %18, %cst_16 {dimension_numbers = #tpu.dot_dimension_numbers<[1], [0], [0], [1], [0, 0, 1, 1], [], []>} : vector<128x128xbf16>, vector<128x128xbf16>, vector<128x128xf32> -> vector<128x128xf32>
    %c0_17 = arith.constant 0 : index
    %c0_18 = arith.constant 0 : index
    %20 = vector.load %arg7[%c0_17, %c0_18] : memref<128x128xf32, #tpu.memory_space<vmem>>, vector<128x128xf32>
    tpu.vector_store %arg7[%c0_17, %c0_18], %19 {strides = array<i32>} : memref<128x128xf32, #tpu.memory_space<vmem>>, vector<128x128xf32>,
    return
  }
}

</mosaic_0001>

<bundles_post_ra>
// kernel: a_call__.1
= control target key start
LH: loop header
LB: loop body
LE: loop exit
PB: predicated region body
PF: predicated region fallthrough
CT: control target
= control target key end

     0   :  { %s1297_s3 = inlined_call_operand.vmem [shape: bf16[128,128], index: 3, kind: input, shape index: {}]   ;;  %s1298_s2 = inlined_call_operand.vmem [shape: bf16[128,128], index: 2, kind: input, shape index: {}]   ;;  %s1299_s0 = inlined_call_operand.vmem [shape: bf16[128,128], index: 0, kind: input, shape index: {}]   ;;  %s1300_s5 = inlined_call_operand.vmem [shape: bf16[128,128], index: 5, kind: input, shape index: {}]   ;;  %s1301_s4 = inlined_call_operand.vmem [shape: f32[1,128], index: 4, kind: input, shape index: {}]   ;;  %s1302_s1 = inlined_call_operand.vmem [shape: bf16[128,128], index: 1, kind: input, shape index: {}]   ;;  %s1303_s6 = inlined_call_operand.vmem [shape: f32[1,128], index: 6, kind: input, shape index: {}]   ;;  %s1304_s7 = inlined_call_operand.vmem [shape: f32[128,128], index: 7, kind: output, shape index: {}]  }
   0x1   :  { %v1043_v0 = vld [vmem:[%s1297_s3] sm:$0xff]   ;;  %v1044_v1 = vld [vmem:[%s1297_s3 + $0x8] sm:$0xff]   ;;  %v1045_v2 = vld [vmem:[%s1297_s3 + $0x10] sm:$0xff]  }
   0x2   :  { %915 = vmatprep.subr.bf16.mxu0 %v1043_v0  ;;  %v1046_v3 = vld [vmem:[%s1297_s3 + $0x18] sm:$0xff]   ;;  %v1051_v4 = vld [vmem:[%s1298_s2] sm:$0xff]   ;;  %v1048_v6 = vld [vmem:[%s1297_s3 + $0x28] sm:$0xff]  }
   0x3   :  { %916 = vmatpush3.bf16.msra.mxu0 %v1043_v0  ;;  %931 = vmatprep.mubr.bf16.mxu0 %v1051_v4  ;;  %v1047_v5 = vld [vmem:[%s1297_s3 + $0x20] sm:$0xff]   ;;  %v1049_v7 = vld [vmem:[%s1297_s3 + $0x30] sm:$0xff]   ;;  %v1050_v8 = vld [vmem:[%s1297_s3 + $0x38] sm:$0xff]  }
   0x4   :  { %917 = vmatprep.subr.bf16.mxu0 %v1044_v1  ;;  %v1052_v9 = vld [vmem:[%s1298_s2 + $0x8] sm:$0xff]   ;;  %v1053_v10 = vld [vmem:[%s1298_s2 + $0x10] sm:$0xff]   ;;  %v1054_v11 = vld [vmem:[%s1298_s2 + $0x18] sm:$0xff]  }
   0x5   :  { %v1055_v12 = vld [vmem:[%s1298_s2 + $0x20] sm:$0xff]   ;;  %v1056_v13 = vld [vmem:[%s1298_s2 + $0x28] sm:$0xff]   ;;  %v1057_v14 = vld [vmem:[%s1298_s2 + $0x30] sm:$0xff]  }
   0x6   :  { %v1058_v15 = vld [vmem:[%s1298_s2 + $0x38] sm:$0xff]   ;;  %v1059_v16 = vld [vmem:[%s1299_s0] sm:$0xff]   ;;  %v1068_v18 = vld [vmem:[%s1300_s5 + $0x8] sm:$0xff]  }
   0x7   :  { %918 = vmatpush3.bf16.msra.mxu0 %v1044_v1  ;;  %963 = vmatprep.mubr.bf16.mxu1 %v1059_v16  ;;  %v1067_v17 = vld [vmem:[%s1300_s5] sm:$0xff]   ;;  %v1069_v19 = vld [vmem:[%s1300_s5 + $0x10] sm:$0xff]   ;;  %v1070_v20 = vld [vmem:[%s1300_s5 + $0x18] sm:$0xff]  }
   0x8   :  { %919 = vmatprep.subr.bf16.mxu0 %v1045_v2  ;;  %v1071_v21 = vld [vmem:[%s1300_s5 + $0x20] sm:$0xff]   ;;  %v1072_v22 = vld [vmem:[%s1300_s5 + $0x28] sm:$0xff]   ;;  %v1061_v1 = vld [vmem:[%s1299_s0 + $0x10] sm:$0xff]  }
   0x9   :  { %v809_v24 = vld [vmem:[%s1301_s4] ss:$0 sm:$0xff]  ;;  %v1060_v0 = vld [vmem:[%s1299_s0 + $0x8] sm:$0xff]  }
   0xa   :  { %v1064_v4 = vld [vmem:[%s1299_s0 + $0x28] sm:$0xff]  }
   0xb   :  { %920 = vmatpush3.bf16.msra.mxu0 %v1045_v2  ;;  %v1062_v2 = vld [vmem:[%s1299_s0 + $0x18] sm:$0xff]  }
   0xc   :  { %921 = vmatprep.subr.bf16.mxu0 %v1046_v3 }
   0xf   :  { %922 = vmatpush3.bf16.msra.mxu0 %v1046_v3  ;;  %v1063_v3 = vld [vmem:[%s1299_s0 + $0x20] sm:$0xff]  }
  0x10   :  { %923 = vmatprep.subr.bf16.mxu0 %v1047_v5 }
  0x13   :  { %924 = vmatpush3.bf16.msra.mxu0 %v1047_v5  ;;  %v1065_v5 = vld [vmem:[%s1299_s0 + $0x30] sm:$0xff]  }
  0x14   :  { %925 = vmatprep.subr.bf16.mxu0 %v1048_v6 }
  0x17   :  { %926 = vmatpush3.bf16.msra.mxu0 %v1048_v6  ;;  %v1066_v6 = vld [vmem:[%s1299_s0 + $0x38] sm:$0xff]  }
  0x18   :  { %927 = vmatprep.subr.bf16.mxu0 %v1049_v7 }
  0x1b   :  { %928 = vmatpush3.bf16.msra.mxu0 %v1049_v7  ;;  %v1073_v7 = vld [vmem:[%s1300_s5 + $0x30] sm:$0xff]  }
  0x1c   :  { %929 = vmatprep.subr.bf16.mxu0 %v1050_v8 }
  0x1f   :  { %930 = vmatpush3.bf16.msra.mxu0 %v1050_v8  ;;  %v1074_v8 = vld [vmem:[%s1300_s5 + $0x38] sm:$0xff]  }
  0x20   :  { %979 = vmatprep.subr.bf16.mxu0 %v1067_v17 }
  0x22   :  { %932 = vmatmul.mubr.bf16.vlgmr.msra.gmra.mrb[0].mxu0 %v1052_v9 }
  0x23   :  { %935 = vmatprep.mubr.bf16.mxu0 %v1053_v10  ;;  %980 = vmatpush3.bf16.msra.mxu0 %v1067_v17 }
  0x24   :  { %981 = vmatprep.subr.bf16.mxu0 %v1068_v18 }
  0x27   :  { %982 = vmatpush3.bf16.msra.mxu0 %v1068_v18 }
  0x28   :  { %983 = vmatprep.subr.bf16.mxu0 %v1069_v19 }
  0x2a   :  { %936 = vmatmul.mubr.bf16.gmra.mrb[4].mxu0 %v1054_v11 }
  0x2b   :  { %939 = vmatprep.mubr.bf16.mxu0 %v1055_v12  ;;  %984 = vmatpush3.bf16.msra.mxu0 %v1069_v19 }
  0x2c   :  { %985 = vmatprep.subr.bf16.mxu0 %v1070_v20 }
  0x2f   :  { %986 = vmatpush3.bf16.msra.mxu0 %v1070_v20 }
  0x30   :  { %987 = vmatprep.subr.bf16.mxu0 %v1071_v21 }
  0x32   :  { %940 = vmatmul.mubr.bf16.gmra.mrb[8].mxu0 %v1056_v13 }
  0x33   :  { %943 = vmatprep.mubr.bf16.mxu0 %v1057_v14  ;;  %988 = vmatpush3.bf16.msra.mxu0 %v1071_v21 }
  0x34   :  { %989 = vmatprep.subr.bf16.mxu0 %v1072_v22 }
  0x37   :  { %990 = vmatpush3.bf16.msra.mxu0 %v1072_v22 }
  0x38   :  { %991 = vmatprep.subr.bf16.mxu0 %v1073_v7 }
  0x3a   :  { %944 = vmatmul.mubr.bf16.gmra.mrb[12].mxu0 %v1058_v15 }
  0x3b   :  { %992 = vmatpush3.bf16.msra.mxu0 %v1073_v7 }
  0x3c   :  { %993 = vmatprep.subr.bf16.mxu0 %v1074_v8 }
  0x3f   :  { %994 = vmatpush3.bf16.msra.mxu0 %v1074_v8 }
  0xf5   :  { %v933_v23 = vpop.f32.mrb[0].mxu0 }
  0xf6   :  { %v196_v25 = vpop.f32.mrb[1].mxu0  ;;  %v205_v27 = vadd.f32 %v933_v23, %v809_v24 }
  0xf7   :  { %v934_v26 = vpop.f32.mrb[2].mxu0  ;;  %v197_v30 = vadd.f32 %v809_v24, %v196_v25 }
  0xf8   :  { %v208_v28 = vadd.f32 %v934_v26, %v809_v24  ;;  %v199_v29 = vpop.f32.mrb[3].mxu0 }
  0xf9   :  { %v200_v31 = vadd.f32 %v809_v24, %v199_v29 }
  0xfa   :  { %v276_v32 = vpack.c.bf16 %v208_v28, %v205_v27 }
  0xfb   :  { %v275_v33 = vpack.c.bf16 %v200_v31, %v197_v30 }
  0xfd   :  { %v937_v34 = vpop.f32.mrb[4].mxu0  ;;  %947 = vmatprep.subr.bf16.mxu1 %v275_v33 }
  0xfe   :  { %v212_v35 = vpop.f32.mrb[5].mxu0  ;;  %948 = vmatpush3.bf16.msra.mxu1 %v275_v33  ;;  %v221_v37 = vadd.f32 %v937_v34, %v809_v24 }
  0xff   :  { %v938_v36 = vpop.f32.mrb[6].mxu0  ;;  %949 = vmatprep.subr.bf16.mxu1 %v276_v32  ;;  %v213_v40 = vadd.f32 %v809_v24, %v212_v35 }
 0x100   :  { %v224_v38 = vadd.f32 %v938_v36, %v809_v24  ;;  %v215_v39 = vpop.f32.mrb[7].mxu0 }
 0x101   :  { %v216_v41 = vadd.f32 %v809_v24, %v215_v39 }
 0x102   :  { %v278_v42 = vpack.c.bf16 %v224_v38, %v221_v37  ;;  %950 = vmatpush3.bf16.msra.mxu1 %v276_v32 }
 0x103   :  { %v277_v43 = vpack.c.bf16 %v216_v41, %v213_v40 }
 0x105   :  { %v941_v44 = vpop.f32.mrb[8].mxu0  ;;  %951 = vmatprep.subr.bf16.mxu1 %v277_v43 }
 0x106   :  { %v228_v45 = vpop.f32.mrb[9].mxu0  ;;  %952 = vmatpush3.bf16.msra.mxu1 %v277_v43  ;;  %v237_v47 = vadd.f32 %v941_v44, %v809_v24 }
 0x107   :  { %v942_v46 = vpop.f32.mrb[10].mxu0  ;;  %953 = vmatprep.subr.bf16.mxu1 %v278_v42  ;;  %v229_v50 = vadd.f32 %v809_v24, %v228_v45 }
 0x108   :  { %v240_v48 = vadd.f32 %v942_v46, %v809_v24  ;;  %v231_v49 = vpop.f32.mrb[11].mxu0 }
 0x109   :  { %v232_v51 = vadd.f32 %v809_v24, %v231_v49  ;;  %v1075_v49 = vld [vmem:[%s1302_s1] sm:$0xff]  }
 0x10a   :  { %v280_v52 = vpack.c.bf16 %v240_v48, %v237_v47  ;;  %954 = vmatpush3.bf16.msra.mxu1 %v278_v42 }
 0x10b   :  { %v279_v53 = vpack.c.bf16 %v232_v51, %v229_v50  ;;  %v834_v51 = vld [vmem:[%s1303_s6] ss:$0 sm:$0xff] }
 0x10d   :  { %v945_v54 = vpop.f32.mrb[12].mxu0  ;;  %955 = vmatprep.subr.bf16.mxu1 %v279_v53 }
 0x10e   :  { %v244_v55 = vpop.f32.mrb[13].mxu0  ;;  %956 = vmatpush3.bf16.msra.mxu1 %v279_v53  ;;  %v253_v57 = vadd.f32 %v945_v54, %v809_v24 }
 0x10f   :  { %v946_v56 = vpop.f32.mrb[14].mxu0  ;;  %957 = vmatprep.subr.bf16.mxu1 %v280_v52  ;;  %v245_v60 = vadd.f32 %v809_v24, %v244_v55 }
 0x110   :  { %v256_v58 = vadd.f32 %v946_v56, %v809_v24  ;;  %v247_v59 = vpop.f32.mrb[15].mxu0 }
 0x111   :  { %v248_v61 = vadd.f32 %v809_v24, %v247_v59 }
 0x112   :  { %v282_v62 = vpack.c.bf16 %v256_v58, %v253_v57  ;;  %958 = vmatpush3.bf16.msra.mxu1 %v280_v52 }
 0x113   :  { %v281_v63 = vpack.c.bf16 %v248_v61, %v245_v60 }
 0x115   :  { %959 = vmatprep.subr.bf16.mxu1 %v281_v63 }
 0x116   :  { %960 = vmatpush3.bf16.msra.mxu1 %v281_v63 }
 0x117   :  { %961 = vmatprep.subr.bf16.mxu1 %v282_v62 }
 0x11a   :  { %962 = vmatpush3.bf16.msra.mxu1 %v282_v62 }
 0x11d   :  { %964 = vmatmul.mubr.bf16.vlgmr.msra.gmra.mrb[0].mxu1 %v1060_v0 }
 0x11e   :  { %967 = vmatprep.mubr.bf16.mxu1 %v1061_v1 }
 0x125   :  { %968 = vmatmul.mubr.bf16.gmra.mrb[4].mxu1 %v1062_v2 }
 0x126   :  { %971 = vmatprep.mubr.bf16.mxu1 %v1063_v3 }
 0x12d   :  { %972 = vmatmul.mubr.bf16.gmra.mrb[8].mxu1 %v1064_v4 }
 0x12e   :  { %975 = vmatprep.mubr.bf16.mxu1 %v1065_v5 }
 0x135   :  { %976 = vmatmul.mubr.bf16.gmra.mrb[12].mxu1 %v1066_v6 }
 0x136   :  { %1027 = vmatprep.mubr.bf16.mxu1 %v1075_v49 }
 0x1f0   :  { %v965_v9 = vpop.f32.mrb[0].mxu1 }
 0x1f1   :  { %v365_v10 = vpop.f32.mrb[1].mxu1  ;;  %v430_v12 = vmax.f32 %v965_v9, 0.0 }
 0x1f2   :  { %v966_v11 = vpop.f32.mrb[2].mxu1  ;;  %v428_v15 = vmax.f32 %v365_v10, 0.0 }
 0x1f3   :  { %v431_v13 = vmax.f32 %v966_v11, 0.0  ;;  %v368_v14 = vpop.f32.mrb[3].mxu1 }
 0x1f4   :  { %v429_v16 = vmax.f32 %v368_v14, 0.0 }
 0x1f5   :  { %v445_v17 = vpack.c.bf16 %v431_v13, %v430_v12 }
 0x1f6   :  { %v444_v18 = vpack.c.bf16 %v429_v16, %v428_v15 }
 0x1f8   :  { %v969_v19 = vpop.f32.mrb[4].mxu1  ;;  %995 = vmatprep.mubr.bf16.mxu0 %v444_v18 }
 0x1f9   :  { %v381_v20 = vpop.f32.mrb[5].mxu1  ;;  %996 = vmatmul.mubr.bf16.vlgmr.msra.gmra.mrb[16].mxu0 %v445_v17  ;;  %v434_v22 = vmax.f32 %v969_v19, 0.0 }
 0x1fa   :  { %v970_v21 = vpop.f32.mrb[6].mxu1  ;;  %v432_v25 = vmax.f32 %v381_v20, 0.0 }
 0x1fb   :  { %v435_v23 = vmax.f32 %v970_v21, 0.0  ;;  %v384_v24 = vpop.f32.mrb[7].mxu1 }
 0x1fc   :  { %v433_v26 = vmax.f32 %v384_v24, 0.0 }
 0x1fd   :  { %v447_v27 = vpack.c.bf16 %v435_v23, %v434_v22 }
 0x1fe   :  { %v446_v28 = vpack.c.bf16 %v433_v26, %v432_v25 }
 0x200   :  { %v973_v29 = vpop.f32.mrb[8].mxu1  ;;  %999 = vmatprep.mubr.bf16.mxu0 %v446_v28  ;;  %v1077_v28 = vld [vmem:[%s1302_s1 + $0x10] sm:$0xff]  }
 0x201   :  { %v397_v30 = vpop.f32.mrb[9].mxu1  ;;  %1000 = vmatmul.mubr.bf16.gmra.mrb[20].mxu0 %v447_v27  ;;  %v438_v32 = vmax.f32 %v973_v29, 0.0  ;;  %v1076_v27 = vld [vmem:[%s1302_s1 + $0x8] sm:$0xff]   ;;  %v1078_v29 = vld [vmem:[%s1302_s1 + $0x18] sm:$0xff]  }
 0x202   :  { %v974_v31 = vpop.f32.mrb[10].mxu1  ;;  %v436_v35 = vmax.f32 %v397_v30, 0.0  ;;  %v1079_v30 = vld [vmem:[%s1302_s1 + $0x20] sm:$0xff]  }
 0x203   :  { %v439_v33 = vmax.f32 %v974_v31, 0.0  ;;  %v400_v34 = vpop.f32.mrb[11].mxu1  ;;  %v1080_v31 = vld [vmem:[%s1302_s1 + $0x28] sm:$0xff]  }
 0x204   :  { %v437_v36 = vmax.f32 %v400_v34, 0.0 }
 0x205   :  { %v449_v37 = vpack.c.bf16 %v439_v33, %v438_v32  ;;  %v1081_v32 = vld [vmem:[%s1302_s1 + $0x30] sm:$0xff]   ;;  %v1082_v33 = vld [vmem:[%s1302_s1 + $0x38] sm:$0xff]  }
 0x206   :  { %v448_v38 = vpack.c.bf16 %v437_v36, %v436_v35 }
 0x208   :  { %v977_v39 = vpop.f32.mrb[12].mxu1  ;;  %1003 = vmatprep.mubr.bf16.mxu0 %v448_v38 }
 0x209   :  { %v413_v40 = vpop.f32.mrb[13].mxu1  ;;  %1004 = vmatmul.mubr.bf16.gmra.mrb[24].mxu0 %v449_v37  ;;  %v442_v42 = vmax.f32 %v977_v39, 0.0 }
 0x20a   :  { %v978_v41 = vpop.f32.mrb[14].mxu1  ;;  %v440_v45 = vmax.f32 %v413_v40, 0.0 }
 0x20b   :  { %v443_v43 = vmax.f32 %v978_v41, 0.0  ;;  %v416_v44 = vpop.f32.mrb[15].mxu1 }
 0x20c   :  { %v441_v46 = vmax.f32 %v416_v44, 0.0 }
 0x20d   :  { %v451_v47 = vpack.c.bf16 %v443_v43, %v442_v42 }
 0x20e   :  { %v450_v48 = vpack.c.bf16 %v441_v46, %v440_v45 }
 0x210   :  { %1007 = vmatprep.mubr.bf16.mxu0 %v450_v48 }
 0x211   :  { %1008 = vmatmul.mubr.bf16.gmra.mrb[28].mxu0 %v451_v47 }
 0x2cc   :  { %v997_v50 = vpop.f32.mrb[16].mxu0 }
 0x2cd   :  { %v557_v52 = vpop.f32.mrb[17].mxu0  ;;  %v566_v54 = vadd.f32 %v997_v50, %v834_v51 }
 0x2ce   :  { %v998_v53 = vpop.f32.mrb[18].mxu0  ;;  %v558_v57 = vadd.f32 %v834_v51, %v557_v52 }
 0x2cf   :  { %v569_v55 = vadd.f32 %v998_v53, %v834_v51  ;;  %v560_v56 = vpop.f32.mrb[19].mxu0 }
 0x2d0   :  { %v561_v58 = vadd.f32 %v834_v51, %v560_v56 }
 0x2d1   :  { %v637_v59 = vpack.c.bf16 %v569_v55, %v566_v54 }
 0x2d2   :  { %v636_v60 = vpack.c.bf16 %v561_v58, %v558_v57 }
 0x2d4   :  { %v1001_v61 = vpop.f32.mrb[20].mxu0  ;;  %1011 = vmatprep.subr.bf16.mxu1 %v636_v60 }
 0x2d5   :  { %v573_v62 = vpop.f32.mrb[21].mxu0  ;;  %1012 = vmatpush3.bf16.msra.mxu1 %v636_v60  ;;  %v582_v0 = vadd.f32 %v1001_v61, %v834_v51 }
 0x2d6   :  { %v1002_v63 = vpop.f32.mrb[22].mxu0  ;;  %1013 = vmatprep.subr.bf16.mxu1 %v637_v59  ;;  %v574_v3 = vadd.f32 %v834_v51, %v573_v62 }
 0x2d7   :  { %v585_v1 = vadd.f32 %v1002_v63, %v834_v51  ;;  %v576_v2 = vpop.f32.mrb[23].mxu0 }
 0x2d8   :  { %v577_v4 = vadd.f32 %v834_v51, %v576_v2 }
 0x2d9   :  { %v639_v5 = vpack.c.bf16 %v585_v1, %v582_v0  ;;  %1014 = vmatpush3.bf16.msra.mxu1 %v637_v59 }
 0x2da   :  { %v638_v6 = vpack.c.bf16 %v577_v4, %v574_v3 }
 0x2dc   :  { %v1005_v7 = vpop.f32.mrb[24].mxu0  ;;  %1015 = vmatprep.subr.bf16.mxu1 %v638_v6 }
 0x2dd   :  { %v589_v8 = vpop.f32.mrb[25].mxu0  ;;  %1016 = vmatpush3.bf16.msra.mxu1 %v638_v6  ;;  %v598_v10 = vadd.f32 %v1005_v7, %v834_v51 }
 0x2de   :  { %v1006_v9 = vpop.f32.mrb[26].mxu0  ;;  %1017 = vmatprep.subr.bf16.mxu1 %v639_v5  ;;  %v590_v13 = vadd.f32 %v834_v51, %v589_v8 }
 0x2df   :  { %v601_v11 = vadd.f32 %v1006_v9, %v834_v51  ;;  %v592_v12 = vpop.f32.mrb[27].mxu0 }
 0x2e0   :  { %v593_v14 = vadd.f32 %v834_v51, %v592_v12 }
 0x2e1   :  { %v641_v15 = vpack.c.bf16 %v601_v11, %v598_v10  ;;  %1018 = vmatpush3.bf16.msra.mxu1 %v639_v5 }
 0x2e2   :  { %v640_v16 = vpack.c.bf16 %v593_v14, %v590_v13 }
 0x2e4   :  { %v1009_v17 = vpop.f32.mrb[28].mxu0  ;;  %1019 = vmatprep.subr.bf16.mxu1 %v640_v16 }
 0x2e5   :  { %v605_v18 = vpop.f32.mrb[29].mxu0  ;;  %1020 = vmatpush3.bf16.msra.mxu1 %v640_v16  ;;  %v614_v20 = vadd.f32 %v1009_v17, %v834_v51 }
 0x2e6   :  { %v1010_v19 = vpop.f32.mrb[30].mxu0  ;;  %1021 = vmatprep.subr.bf16.mxu1 %v641_v15  ;;  %v606_v23 = vadd.f32 %v834_v51, %v605_v18 }
 0x2e7   :  { %v617_v21 = vadd.f32 %v1010_v19, %v834_v51  ;;  %v608_v22 = vpop.f32.mrb[31].mxu0 }
 0x2e8   :  { %v609_v24 = vadd.f32 %v834_v51, %v608_v22 }
 0x2e9   :  { %v643_v25 = vpack.c.bf16 %v617_v21, %v614_v20  ;;  %1022 = vmatpush3.bf16.msra.mxu1 %v641_v15 }
 0x2ea   :  { %v642_v26 = vpack.c.bf16 %v609_v24, %v606_v23 }
 0x2ec   :  { %1023 = vmatprep.subr.bf16.mxu1 %v642_v26 }
 0x2ed   :  { %1024 = vmatpush3.bf16.msra.mxu1 %v642_v26 }
 0x2ee   :  { %1025 = vmatprep.subr.bf16.mxu1 %v643_v25 }
 0x2f1   :  { %1026 = vmatpush3.bf16.msra.mxu1 %v643_v25 }
 0x2f4   :  { %1028 = vmatmul.mubr.bf16.vlgmr.msra.gmra.mrb[16].mxu1 %v1076_v27 }
 0x2f5   :  { %1031 = vmatprep.mubr.bf16.mxu1 %v1077_v28 }
 0x2fc   :  { %1032 = vmatmul.mubr.bf16.gmra.mrb[20].mxu1 %v1078_v29 }
 0x2fd   :  { %1035 = vmatprep.mubr.bf16.mxu1 %v1079_v30 }
 0x304   :  { %1036 = vmatmul.mubr.bf16.gmra.mrb[24].mxu1 %v1080_v31 }
 0x305   :  { %1039 = vmatprep.mubr.bf16.mxu1 %v1081_v32 }
 0x30c   :  { %1040 = vmatmul.mubr.bf16.gmra.mrb[28].mxu1 %v1082_v33 }
 0x3c7   :  { %v1029_v34 = vpop.f32.mrb[16].mxu1 }
 0x3c8   :  { %791 = vst [vmem:[%s1304_s7 + $0x10] sm:$0xff] %v1029_v34  ;;  %v726_v35 = vpop.f32.mrb[17].mxu1 }
 0x3c9   :  { %789 = vst [vmem:[%s1304_s7] sm:$0xff] %v726_v35  ;;  %v1030_v36 = vpop.f32.mrb[18].mxu1 }
 0x3ca   :  { %792 = vst [vmem:[%s1304_s7 + $0x18] sm:$0xff] %v1030_v36  ;;  %v729_v37 = vpop.f32.mrb[19].mxu1 }
 0x3cb   :  { %790 = vst [vmem:[%s1304_s7 + $0x8] sm:$0xff] %v729_v37 }
 0x3cf   :  { %v1033_v38 = vpop.f32.mrb[20].mxu1 }
 0x3d0   :  { %795 = vst [vmem:[%s1304_s7 + $0x30] sm:$0xff] %v1033_v38  ;;  %v742_v39 = vpop.f32.mrb[21].mxu1 }
 0x3d1   :  { %793 = vst [vmem:[%s1304_s7 + $0x20] sm:$0xff] %v742_v39  ;;  %v1034_v40 = vpop.f32.mrb[22].mxu1 }
 0x3d2   :  { %796 = vst [vmem:[%s1304_s7 + $0x38] sm:$0xff] %v1034_v40  ;;  %v745_v41 = vpop.f32.mrb[23].mxu1 }
 0x3d3   :  { %794 = vst [vmem:[%s1304_s7 + $0x28] sm:$0xff] %v745_v41 }
 0x3d7   :  { %v1037_v42 = vpop.f32.mrb[24].mxu1 }
 0x3d8   :  { %799 = vst [vmem:[%s1304_s7 + $0x50] sm:$0xff] %v1037_v42  ;;  %v758_v43 = vpop.f32.mrb[25].mxu1 }
 0x3d9   :  { %797 = vst [vmem:[%s1304_s7 + $0x40] sm:$0xff] %v758_v43  ;;  %v1038_v44 = vpop.f32.mrb[26].mxu1 }
 0x3da   :  { %800 = vst [vmem:[%s1304_s7 + $0x58] sm:$0xff] %v1038_v44  ;;  %v761_v45 = vpop.f32.mrb[27].mxu1 }
 0x3db   :  { %798 = vst [vmem:[%s1304_s7 + $0x48] sm:$0xff] %v761_v45 }
 0x3df   :  { %v1041_v46 = vpop.f32.mrb[28].mxu1 }
 0x3e0   :  { %803 = vst [vmem:[%s1304_s7 + $0x70] sm:$0xff] %v1041_v46  ;;  %v774_v47 = vpop.f32.mrb[29].mxu1 }
 0x3e1   :  { %801 = vst [vmem:[%s1304_s7 + $0x60] sm:$0xff] %v774_v47  ;;  %v1042_v48 = vpop.f32.mrb[30].mxu1 }
 0x3e2   :  { %804 = vst [vmem:[%s1304_s7 + $0x78] sm:$0xff] %v1042_v48  ;;  %v777_v49 = vpop.f32.mrb[31].mxu1 }
 0x3e3   :  { %802 = vst [vmem:[%s1304_s7 + $0x68] sm:$0xff] %v777_v49 }

</bundles_post_ra>
